<compile_context>
chip_gen: v7x
topology: tpu7x:2x2x1
jax: 0.10.0
libtpu: 0.0.40
codegen_flags: <defaults>
</compile_context>

<pallas_src>
import jax
import jax.numpy as jnp
from jax.experimental import pallas as pl
from jax.experimental.pallas import tpu as pltpu

_HIDDEN = 128          # per-branch hidden width
_OUT = 64              # per-branch output width
_H2 = 2 * _HIDDEN      # 256: both hidden blocks packed on lanes
_O2 = 2 * _OUT         # 128: both output blocks packed on lanes


def _fused_mlp_kernel(xr_ref, xj_ref, wr1_ref, wj1_ref, b1_ref, w2_ref, b2_ref,
                      o_ref):
    """One batch tile of BOTH MLPs.

    xr_ref : (TILE_B, D)   f32   resume features (cast to bf16 here)
    xj_ref : (TILE_B, D)   f32   job features    (cast to bf16 here)
    wr1_ref: (D, 128)      bf16  fc_resume layer-1 weight
    wj1_ref: (D, 128)      bf16  fc_job    layer-1 weight
    b1_ref : (1, 256)      f32   [fc_resume.b1 | fc_job.b1]
    w2_ref : (256, 128)    bf16  block-diag(fc_resume.W2, fc_job.W2)
    b2_ref : (1, 128)      f32   [fc_resume.b2 | fc_job.b2]
    o_ref  : (TILE_B, 128) f32   lanes [0:64)=resume_out, [64:128)=job_out
    """
    wdt = wr1_ref.dtype
    # Layer 1: two real matmuls on the MXU (bf16 operands, f32 accumulation).
    # The f32->bf16 casts are cheap VPU work hidden under DMA/MXU.
    hr = jnp.dot(xr_ref[...].astype(wdt), wr1_ref[...],
                 preferred_element_type=jnp.float32)
    hj = jnp.dot(xj_ref[...].astype(wdt), wj1_ref[...],
                 preferred_element_type=jnp.float32)
    # Concat at a 128-lane vreg boundary -> free; bias + ReLU in f32 on the VPU.
    h = jnp.maximum(jnp.concatenate([hr, hj], axis=-1) + b1_ref[...], 0.0)
    # Layer 2: block-diagonal W2 keeps the result 128-lane dense.
    y = jnp.dot(h.astype(w2_ref.dtype), w2_ref[...],
                preferred_element_type=jnp.float32)
    o_ref[...] = (y + b2_ref[...]).astype(o_ref.dtype)


def _plan_tiles(B, D):
    """Pick (tile_b, padded_b, vmem_limit_bytes) from D and the VMEM budget."""
    # Resident weights/biases (assume worst-case double-buffering even though
    # we request Buffered(1) for them).
    weight_bytes = 2 * (2 * D * _HIDDEN * 2 + _H2 * _O2 * 2 + (_H2 + _O2) * 4)
    # Streamed bytes per batch row, double-buffered: two f32 D-wide inputs
    # plus the f32 128-wide output.
    per_row = 2 * (2 * D * 4 + _O2 * 4)
    budget = 12 << 20  # conservative: fits v5e 16 MiB scoped & v7x 32 MiB scoped
    cap = max(8, min(1024, ((budget - weight_bytes) // per_row // 8) * 8))

    if B <= cap:
        if B >= 16 and B % 16 == 0:
            # >=2 grid steps so v7x can shard batch tiles across both cores.
            tile_b, padded_b = B // 2, B
        else:
            tile_b, padded_b = B, B
    else:
        tile_b, padded_b = None, None
        t = (min(cap, B) // 8) * 8
        while t >= 8:                      # prefer a tile that divides B
            if B % t == 0:                 # (no pad copy, no output trim)
                tile_b, padded_b = t, B
                break
            t -= 8
        if tile_b is None:                 # ragged fallback: pad the batch
            tile_b = cap
            padded_b = pl.cdiv(B, cap) * cap

    vmem_limit = int(min(max(weight_bytes + per_row * tile_b + (4 << 20),
                             16 << 20), 48 << 20))
    return tile_b, padded_b, vmem_limit


def _fused_mlp_pallas(x_res, x_job, wr1, wj1, b1, w2, b2):
    """Run both MLPs as a single pipelined Pallas kernel.

    x_res, x_job : (B, D) f32.
    Returns (B, 128) f32: lanes [0:64) resume_out, [64:128) job_out.
    """
    B, D = x_res.shape
    tile_b, padded_b, vmem_limit = _plan_tiles(B, D)

    if padded_b != B:
        pad = padded_b - B
        x_res = jnp.pad(x_res, ((0, pad), (0, 0)))
        x_job = jnp.pad(x_job, ((0, pad), (0, 0)))

    grid = (padded_b // tile_b,)

    weight_bytes_once = 2 * D * _HIDDEN * 2 + _H2 * _O2 * 2 + (_H2 + _O2) * 4
    cost = pl.CostEstimate(
        flops=2 * padded_b * (2 * D * _HIDDEN + _H2 * _O2),
        transcendentals=0,
        bytes_accessed=padded_b * (2 * D * 4 + _O2 * 4) + weight_bytes_once,
    )

    def stream_spec(shape):
        return pl.BlockSpec(shape, lambda i: (i, 0))

    def resident_spec(shape, single_buffer):
        if single_buffer:
            # Constant index_map -> never re-DMA'd; one VMEM copy is enough.
            return pl.BlockSpec(shape, lambda i: (0, 0),
                                pipeline_mode=pl.Buffered(1))
        return pl.BlockSpec(shape, lambda i: (0, 0))

    def run(single_buffer_weights):
        return pl.pallas_call(
            _fused_mlp_kernel,
            out_shape=jax.ShapeDtypeStruct((padded_b, _O2), jnp.float32),
            grid=grid,
            in_specs=[
                stream_spec((tile_b, D)),                         # resume rows
                stream_spec((tile_b, D)),                         # job rows
                resident_spec((D, _HIDDEN), single_buffer_weights),   # W1_res
                resident_spec((D, _HIDDEN), single_buffer_weights),   # W1_job
                resident_spec((1, _H2), single_buffer_weights),       # b1
                resident_spec((_H2, _O2), single_buffer_weights),     # W2 (bd)
                resident_spec((1, _O2), single_buffer_weights),       # b2
            ],
            out_specs=pl.BlockSpec((tile_b, _O2), lambda i: (i, 0)),
            compiler_params=pltpu.CompilerParams(
                dimension_semantics=("parallel",),   # megacore on v7x
                vmem_limit_bytes=vmem_limit),
            cost_estimate=cost,
        )(x_res, x_job, wr1, wj1, b1, w2, b2)

    try:
        out = run(True)
    except Exception:
        # Fallback if this JAX build rejects pl.Buffered(1) on pallas_call specs.
        out = run(False)

    return out if padded_b == B else out[:B]


def init_matching_model_params(key, embedding_dim, hidden=_HIDDEN, out=_OUT):
    """Deterministic synthetic parameter init (PyTorch Linear shapes, stored
    transposed as (in, out) for y = x @ W + b)."""
    ks = jax.random.split(key, 8)

    def lin(kw, kb, fan_in, fan_out):
        bound = 1.0 / jnp.sqrt(jnp.float32(fan_in))
        w = jax.random.uniform(kw, (fan_in, fan_out), jnp.float32, -bound, bound)
        b = jax.random.uniform(kb, (1, fan_out), jnp.float32, -bound, bound)
        return w, b

    rw1, rb1 = lin(ks[0], ks[1], embedding_dim, hidden)
    rw2, rb2 = lin(ks[2], ks[3], hidden, out)
    jw1, jb1 = lin(ks[4], ks[5], embedding_dim, hidden)
    jw2, jb2 = lin(ks[6], ks[7], hidden, out)
    return {"resume": (rw1, rb1, rw2, rb2), "job": (jw1, jb1, jw2, jb2)}


def pack_fused_params(params, mxu_dtype=jnp.bfloat16):
    """Pack parameters once: separate layer-1 weights, block-diag layer-2.
    Weights go to bf16 for the MXU; biases stay f32."""
    rw1, rb1, rw2, rb2 = params["resume"]
    jw1, jb1, jw2, jb2 = params["job"]
    H = rw1.shape[1]
    O = rw2.shape[1]

    w2 = jnp.zeros((2 * H, 2 * O), jnp.float32)
    w2 = w2.at[:H, :O].set(rw2).at[H:, O:].set(jw2)       # block-diag (256,128)

    return {
        "w1_resume": rw1.astype(mxu_dtype),               # (D, 128)
        "w1_job": jw1.astype(mxu_dtype),                  # (D, 128)
        "b1": jnp.concatenate([rb1, jb1], axis=1),        # (1, 256) f32
        "w2": w2.astype(mxu_dtype),                       # (256, 128)
        "b2": jnp.concatenate([rb2, jb2], axis=1),        # (1, 128) f32
        "out_dim": O,
    }


def matching_model_forward(fused_params, resume_embedding, job_desc_embedding):
    """Pallas equivalent of MatchingModel.forward -> (resume_out, job_out)."""
    out = _fused_mlp_pallas(
        resume_embedding.astype(jnp.float32),
        job_desc_embedding.astype(jnp.float32),
        fused_params["w1_resume"], fused_params["w1_job"], fused_params["b1"],
        fused_params["w2"], fused_params["b2"])
    o = fused_params["out_dim"]
    # Free slices of the lane-dense (B, 128) packed result.
    return out[:, :o], out[:, o:]


def _reference_forward(params, resume_embedding, job_desc_embedding):
    """Pure-JAX f32 reference for correctness check."""
    def mlp(x, w1, b1, w2, b2):
        h = jnp.maximum(x @ w1 + b1, 0.0)
        return h @ w2 + b2
    return (mlp(resume_embedding, *params["resume"]),
            mlp(job_desc_embedding, *params["job"]))


if __name__ == "__main__":
    key = jax.random.PRNGKey(0)
    k_params, k_res, k_job = jax.random.split(key, 3)

    batch = 2
    embedding_dim = 32

    params = init_matching_model_params(k_params, embedding_dim)
    fused = pack_fused_params(params)

    resume_emb = jax.random.normal(k_res, (batch, embedding_dim), jnp.float32)
    job_emb = jax.random.normal(k_job, (batch, embedding_dim), jnp.float32)

    resume_out, job_out = matching_model_forward(fused, resume_emb, job_emb)
    jax.block_until_ready((resume_out, job_out))

    ref_resume, ref_job = _reference_forward(params, resume_emb, job_emb)
    assert resume_out.shape == (batch, _OUT) and job_out.shape == (batch, _OUT)
    # bf16 weights on the MXU with f32 accumulation: loosened tolerance vs f32.
    assert jnp.allclose(resume_out, ref_resume, atol=3e-2, rtol=3e-2)
    assert jnp.allclose(job_out, ref_job, atol=3e-2, rtol=3e-2)

    print("KERNEL_OK")
</pallas_src>

<mosaic_0001>
module attributes {stable_mosaic.version = 11 : i64} {
  func.func @_fused_mlp_kernel(%arg0: i32, %arg1: memref<2x32xf32, #tpu.memory_space<vmem>>, %arg2: memref<2x32xf32, #tpu.memory_space<vmem>>, %arg3: memref<32x128xbf16, #tpu.memory_space<vmem>>, %arg4: memref<32x128xbf16, #tpu.memory_space<vmem>>, %arg5: memref<1x256xf32, #tpu.memory_space<vmem>>, %arg6: memref<256x128xbf16, #tpu.memory_space<vmem>>, %arg7: memref<1x128xf32, #tpu.memory_space<vmem>>, %arg8: memref<2x128xf32, #tpu.memory_space<vmem>>) attributes {dimension_semantics = [#tpu.dimension_semantics<parallel>], iteration_bounds = array<i64: 1>, scalar_prefetch = 0 : i64, scratch_operands = 0 : i64, tpu.core_type = #tpu.core_type<tc>, window_params = [{transform_indices = @transform_0, window_bounds = array<i64: 2, 32>}, {transform_indices = @transform_1, window_bounds = array<i64: 2, 32>}, {pipeline_mode = #tpu.pipeline_mode<synchronous>, transform_indices = @transform_2, window_bounds = array<i64: 32, 128>}, {pipeline_mode = #tpu.pipeline_mode<synchronous>, transform_indices = @transform_3, window_bounds = array<i64: 32, 128>}, {pipeline_mode = #tpu.pipeline_mode<synchronous>, transform_indices = @transform_4, window_bounds = array<i64: 1, 256>}, {pipeline_mode = #tpu.pipeline_mode<synchronous>, transform_indices = @transform_5, window_bounds = array<i64: 256, 128>}, {pipeline_mode = #tpu.pipeline_mode<synchronous>, transform_indices = @transform_6, window_bounds = array<i64: 1, 128>}, {transform_indices = @transform_7, window_bounds = array<i64: 2, 128>}]} {
    %c0 = arith.constant 0 : index
    %c0_0 = arith.constant 0 : index
    %0 = vector.load %arg1[%c0, %c0_0] : memref<2x32xf32, #tpu.memory_space<vmem>>, vector<2x32xf32>
    %1 = arith.truncf %0 : vector<2x32xf32> to vector<2x32xbf16>
    %c0_1 = arith.constant 0 : index
    %c0_2 = arith.constant 0 : index
    %2 = vector.load %arg3[%c0_1, %c0_2] : memref<32x128xbf16, #tpu.memory_space<vmem>>, vector<32x128xbf16>
    %cst = arith.constant dense<0.000000e+00> : vector<2x128xf32>
    %3 = tpu.matmul %1, %2, %cst {dimension_numbers = #tpu.dot_dimension_numbers<[1], [0], [0], [1], [0, 0, 1, 1], [], []>} : vector<2x32xbf16>, vector<32x128xbf16>, vector<2x128xf32> -> vector<2x128xf32>
    %c0_3 = arith.constant 0 : index
    %c0_4 = arith.constant 0 : index
    %4 = vector.load %arg2[%c0_3, %c0_4] : memref<2x32xf32, #tpu.memory_space<vmem>>, vector<2x32xf32>
    %5 = arith.truncf %4 : vector<2x32xf32> to vector<2x32xbf16>
    %c0_5 = arith.constant 0 : index
    %c0_6 = arith.constant 0 : index
    %6 = vector.load %arg4[%c0_5, %c0_6] : memref<32x128xbf16, #tpu.memory_space<vmem>>, vector<32x128xbf16>
    %cst_7 = arith.constant dense<0.000000e+00> : vector<2x128xf32>
    %7 = tpu.matmul %5, %6, %cst_7 {dimension_numbers = #tpu.dot_dimension_numbers<[1], [0], [0], [1], [0, 0, 1, 1], [], []>} : vector<2x32xbf16>, vector<32x128xbf16>, vector<2x128xf32> -> vector<2x128xf32>
    %8 = tpu.concatenate %3, %7 in 1 : vector<2x128xf32>, vector<2x128xf32> -> vector<2x256xf32>
    %c0_8 = arith.constant 0 : index
    %c0_9 = arith.constant 0 : index
    %9 = vector.load %arg5[%c0_8, %c0_9] : memref<1x256xf32, #tpu.memory_space<vmem>>, vector<1x256xf32>
    %10 = vector.broadcast %9 : vector<1x256xf32> to vector<2x256xf32>
    %11 = arith.addf %8, %10 : vector<2x256xf32>
    %cst_10 = arith.constant 0.000000e+00 : f32
    %12 = vector.broadcast %cst_10 : f32 to vector<2x256xf32>
    %13 = arith.maximumf %11, %12 : vector<2x256xf32>
    %14 = arith.truncf %13 : vector<2x256xf32> to vector<2x256xbf16>
    %c0_11 = arith.constant 0 : index
    %c0_12 = arith.constant 0 : index
    %15 = vector.load %arg6[%c0_11, %c0_12] : memref<256x128xbf16, #tpu.memory_space<vmem>>, vector<256x128xbf16>
    %cst_13 = arith.constant dense<0.000000e+00> : vector<2x128xf32>
    %16 = tpu.matmul %14, %15, %cst_13 {dimension_numbers = #tpu.dot_dimension_numbers<[1], [0], [0], [1], [0, 0, 1, 1], [], []>} : vector<2x256xbf16>, vector<256x128xbf16>, vector<2x128xf32> -> vector<2x128xf32>
    %c0_14 = arith.constant 0 : index
    %c0_15 = arith.constant 0 : index
    %17 = vector.load %arg7[%c0_14, %c0_15] : memref<1x128xf32, #tpu.memory_space<vmem>>, vector<1x128xf32>
    %18 = vector.broadcast %17 : vector<1x128xf32> to vector<2x128xf32>
    %19 = arith.addf %16, %18 : vector<2x128xf32>
    %c0_16 = arith.constant 0 : index
    %c0_17 = arith.constant 0 : index
    %20 = vector.load %arg8[%c0_16, %c0_17] : memref<2x128xf32, #tpu.memory_space<vmem>>, vector<2x128xf32>
    tpu.vector_store %arg8[%c0_16, %c0_17], %19 {strides = array<i32>} : memref<2x128xf32, #tpu.memory_space<vmem>>, vector<2x128xf32>,
    return
  }
  func.func @transform_0(%arg0: i32) -> (i32, i32) {
    %c0_i32 = arith.constant 0 : i32
    %c0_i32_0 = arith.constant 0 : i32
    return %arg0, %c0_i32 : i32, i32
  }
  func.func @transform_1(%arg0: i32) -> (i32, i32) {
    %c0_i32 = arith.constant 0 : i32
    %c0_i32_0 = arith.constant 0 : i32
    return %arg0, %c0_i32 : i32, i32
  }
  func.func @transform_2(%arg0: i32) -> (i32, i32) {
    %c0_i32 = arith.constant 0 : i32
    %c0_i32_0 = arith.constant 0 : i32
    %c0_i32_1 = arith.constant 0 : i32
    return %c0_i32, %c0_i32_0 : i32, i32
  }
  func.func @transform_3(%arg0: i32) -> (i32, i32) {
    %c0_i32 = arith.constant 0 : i32
    %c0_i32_0 = arith.constant 0 : i32
    %c0_i32_1 = arith.constant 0 : i32
    return %c0_i32, %c0_i32_0 : i32, i32
  }
  func.func @transform_4(%arg0: i32) -> (i32, i32) {
    %c0_i32 = arith.constant 0 : i32
    %c0_i32_0 = arith.constant 0 : i32
    %c0_i32_1 = arith.constant 0 : i32
    return %c0_i32, %c0_i32_0 : i32, i32
  }
  func.func @transform_5(%arg0: i32) -> (i32, i32) {
    %c0_i32 = arith.constant 0 : i32
    %c0_i32_0 = arith.constant 0 : i32
    %c0_i32_1 = arith.constant 0 : i32
    return %c0_i32, %c0_i32_0 : i32, i32
  }
  func.func @transform_6(%arg0: i32) -> (i32, i32) {
    %c0_i32 = arith.constant 0 : i32
    %c0_i32_0 = arith.constant 0 : i32
    %c0_i32_1 = arith.constant 0 : i32
    return %c0_i32, %c0_i32_0 : i32, i32
  }
  func.func @transform_7(%arg0: i32) -> (i32, i32) {
    %c0_i32 = arith.constant 0 : i32
    %c0_i32_0 = arith.constant 0 : i32
    return %arg0, %c0_i32 : i32, i32
  }
}

module attributes {stable_mosaic.version = 11 : i64} {
  func.func @_fused_mlp_kernel(%arg0: i32, %arg1: memref<2x32xf32, #tpu.memory_space<vmem>>, %arg2: memref<2x32xf32, #tpu.memory_space<vmem>>, %arg3: memref<32x128xbf16, #tpu.memory_space<vmem>>, %arg4: memref<32x128xbf16, #tpu.memory_space<vmem>>, %arg5: memref<1x256xf32, #tpu.memory_space<vmem>>, %arg6: memref<256x128xbf16, #tpu.memory_space<vmem>>, %arg7: memref<1x128xf32, #tpu.memory_space<vmem>>, %arg8: memref<2x128xf32, #tpu.memory_space<vmem>>) attributes {dimension_semantics = [#tpu.dimension_semantics<parallel>], iteration_bounds = array<i64: 1>, scalar_prefetch = 0 : i64, scratch_operands = 0 : i64, tpu.core_type = #tpu.core_type<tc>, window_params = [{transform_indices = @transform_0, window_bounds = array<i64: 2, 32>}, {transform_indices = @transform_1, window_bounds = array<i64: 2, 32>}, {pipeline_mode = #tpu.pipeline_mode<synchronous>, transform_indices = @transform_2, window_bounds = array<i64: 32, 128>}, {pipeline_mode = #tpu.pipeline_mode<synchronous>, transform_indices = @transform_3, window_bounds = array<i64: 32, 128>}, {pipeline_mode = #tpu.pipeline_mode<synchronous>, transform_indices = @transform_4, window_bounds = array<i64: 1, 256>}, {pipeline_mode = #tpu.pipeline_mode<synchronous>, transform_indices = @transform_5, window_bounds = array<i64: 256, 128>}, {pipeline_mode = #tpu.pipeline_mode<synchronous>, transform_indices = @transform_6, window_bounds = array<i64: 1, 128>}, {transform_indices = @transform_7, window_bounds = array<i64: 2, 128>}]} {
    %c0 = arith.constant 0 : index
    %c0_0 = arith.constant 0 : index
    %0 = vector.load %arg1[%c0, %c0_0] : memref<2x32xf32, #tpu.memory_space<vmem>>, vector<2x32xf32>
    %1 = arith.truncf %0 : vector<2x32xf32> to vector<2x32xbf16>
    %c0_1 = arith.constant 0 : index
    %c0_2 = arith.constant 0 : index
    %2 = vector.load %arg3[%c0_1, %c0_2] : memref<32x128xbf16, #tpu.memory_space<vmem>>, vector<32x128xbf16>
    %cst = arith.constant dense<0.000000e+00> : vector<2x128xf32>
    %3 = tpu.matmul %1, %2, %cst {dimension_numbers = #tpu.dot_dimension_numbers<[1], [0], [0], [1], [0, 0, 1, 1], [], []>} : vector<2x32xbf16>, vector<32x128xbf16>, vector<2x128xf32> -> vector<2x128xf32>
    %c0_3 = arith.constant 0 : index
    %c0_4 = arith.constant 0 : index
    %4 = vector.load %arg2[%c0_3, %c0_4] : memref<2x32xf32, #tpu.memory_space<vmem>>, vector<2x32xf32>
    %5 = arith.truncf %4 : vector<2x32xf32> to vector<2x32xbf16>
    %c0_5 = arith.constant 0 : index
    %c0_6 = arith.constant 0 : index
    %6 = vector.load %arg4[%c0_5, %c0_6] : memref<32x128xbf16, #tpu.memory_space<vmem>>, vector<32x128xbf16>
    %cst_7 = arith.constant dense<0.000000e+00> : vector<2x128xf32>
    %7 = tpu.matmul %5, %6, %cst_7 {dimension_numbers = #tpu.dot_dimension_numbers<[1], [0], [0], [1], [0, 0, 1, 1], [], []>} : vector<2x32xbf16>, vector<32x128xbf16>, vector<2x128xf32> -> vector<2x128xf32>
    %8 = tpu.concatenate %3, %7 in 1 : vector<2x128xf32>, vector<2x128xf32> -> vector<2x256xf32>
    %c0_8 = arith.constant 0 : index
    %c0_9 = arith.constant 0 : index
    %9 = vector.load %arg5[%c0_8, %c0_9] : memref<1x256xf32, #tpu.memory_space<vmem>>, vector<1x256xf32>
    %10 = vector.broadcast %9 : vector<1x256xf32> to vector<2x256xf32>
    %11 = arith.addf %8, %10 : vector<2x256xf32>
    %cst_10 = arith.constant 0.000000e+00 : f32
    %12 = vector.broadcast %cst_10 : f32 to vector<2x256xf32>
    %13 = arith.maximumf %11, %12 : vector<2x256xf32>
    %14 = arith.truncf %13 : vector<2x256xf32> to vector<2x256xbf16>
    %c0_11 = arith.constant 0 : index
    %c0_12 = arith.constant 0 : index
    %15 = vector.load %arg6[%c0_11, %c0_12] : memref<256x128xbf16, #tpu.memory_space<vmem>>, vector<256x128xbf16>
    %cst_13 = arith.constant dense<0.000000e+00> : vector<2x128xf32>
    %16 = tpu.matmul %14, %15, %cst_13 {dimension_numbers = #tpu.dot_dimension_numbers<[1], [0], [0], [1], [0, 0, 1, 1], [], []>} : vector<2x256xbf16>, vector<256x128xbf16>, vector<2x128xf32> -> vector<2x128xf32>
    %c0_14 = arith.constant 0 : index
    %c0_15 = arith.constant 0 : index
    %17 = vector.load %arg7[%c0_14, %c0_15] : memref<1x128xf32, #tpu.memory_space<vmem>>, vector<1x128xf32>
    %18 = vector.broadcast %17 : vector<1x128xf32> to vector<2x128xf32>
    %19 = arith.addf %16, %18 : vector<2x128xf32>
    %c0_16 = arith.constant 0 : index
    %c0_17 = arith.constant 0 : index
    %20 = vector.load %arg8[%c0_16, %c0_17] : memref<2x128xf32, #tpu.memory_space<vmem>>, vector<2x128xf32>
    tpu.vector_store %arg8[%c0_16, %c0_17], %19 {strides = array<i32>} : memref<2x128xf32, #tpu.memory_space<vmem>>, vector<2x128xf32>,
    return
  }
  func.func @transform_0(%arg0: i32) -> (i32, i32) {
    %c0_i32 = arith.constant 0 : i32
    %c0_i32_0 = arith.constant 0 : i32
    return %arg0, %c0_i32 : i32, i32
  }
  func.func @transform_1(%arg0: i32) -> (i32, i32) {
    %c0_i32 = arith.constant 0 : i32
    %c0_i32_0 = arith.constant 0 : i32
    return %arg0, %c0_i32 : i32, i32
  }
  func.func @transform_2(%arg0: i32) -> (i32, i32) {
    %c0_i32 = arith.constant 0 : i32
    %c0_i32_0 = arith.constant 0 : i32
    %c0_i32_1 = arith.constant 0 : i32
    return %c0_i32, %c0_i32_0 : i32, i32
  }
  func.func @transform_3(%arg0: i32) -> (i32, i32) {
    %c0_i32 = arith.constant 0 : i32
    %c0_i32_0 = arith.constant 0 : i32
    %c0_i32_1 = arith.constant 0 : i32
    return %c0_i32, %c0_i32_0 : i32, i32
  }
  func.func @transform_4(%arg0: i32) -> (i32, i32) {
    %c0_i32 = arith.constant 0 : i32
    %c0_i32_0 = arith.constant 0 : i32
    %c0_i32_1 = arith.constant 0 : i32
    return %c0_i32, %c0_i32_0 : i32, i32
  }
  func.func @transform_5(%arg0: i32) -> (i32, i32) {
    %c0_i32 = arith.constant 0 : i32
    %c0_i32_0 = arith.constant 0 : i32
    %c0_i32_1 = arith.constant 0 : i32
    return %c0_i32, %c0_i32_0 : i32, i32
  }
  func.func @transform_6(%arg0: i32) -> (i32, i32) {
    %c0_i32 = arith.constant 0 : i32
    %c0_i32_0 = arith.constant 0 : i32
    %c0_i32_1 = arith.constant 0 : i32
    return %c0_i32, %c0_i32_0 : i32, i32
  }
  func.func @transform_7(%arg0: i32) -> (i32, i32) {
    %c0_i32 = arith.constant 0 : i32
    %c0_i32_0 = arith.constant 0 : i32
    return %arg0, %c0_i32 : i32, i32
  }
}

</mosaic_0001>

<bundles_post_ra>
// kernel: tpu_custom_call.1
= control target key start
LH: loop header
LB: loop body
LE: loop exit
PB: predicated region body
PF: predicated region fallthrough
CT: control target
= control target key end

     0   :  { %12 = vsyncpa [#allocation3], 0  ;;  %s760_s0 = inlined_call_operand.hbm [shape: f32[2,32], index: 0, kind: input, shape index: {}]   ;;  %s761_s1 = inlined_call_operand.vmem [shape: f32[2,32], index: 1, kind: input, shape index: {}]   ;;  %s762_s2 = inlined_call_operand.hbm [shape: bf16[32,128], index: 2, kind: input, shape index: {}]   ;;  %s763_s3 = inlined_call_operand.hbm [shape: bf16[32,128], index: 3, kind: input, shape index: {}]   ;;  %s764_s4 = inlined_call_operand.vmem [shape: f32[1,256], index: 4, kind: input, shape index: {}]   ;;  %s765_s5 = inlined_call_operand.hbm [shape: bf16[256,128], index: 5, kind: input, shape index: {}]   ;;  %s766_s6 = inlined_call_operand.vmem [shape: f32[1,128], index: 6, kind: input, shape index: {}]   ;;  %s767_s7 = inlined_call_operand.hbm [shape: f32[2,128], index: 7, kind: output, shape index: {}]  }
   0x1   :  { %13 = vsyncpa [#allocation6], 0 }
   0x2   :  { %14 = vsyncpa [#allocation9], 0 }
   0x3   :  { %15 = vsyncpa [#allocation4], 0  ;;  %s629_s24 = smov [#allocation5]   ;;  %s511_s28 = scalar_lea.hbm %s762_s2, 256 }
   0x4   :  { %s33_s25 = sshll.u32 %s629_s24, 4  ;;  %p512_p0 = scmp.ne.s32.totalorder %s762_s2, %s511_s28  ;;  %s34_s25 = int_to_ptr.vmem [resolvable:$true] %s33_s25 }
   0x5   :  { %p515_p1 = scmp.lt.u32.totalorder %s511_s28, %s762_s2 }
   0x7   :  { %p517_p2 = pnand %p515_p1, %p512_p0 }
   0x9   :  { %520 = shalt.err (!%p517_p2)
}
   0xa   :  { %s521_s10 = scalar_lea.vmem %s34_s25, 256  ;;  %p526_p4 = scmp.lt.s32.totalorder %s34_s25, %s34_s25 }
   0xb   :  { %p522_p3 = scmp.ne.s32.totalorder %s34_s25, %s521_s10  ;;  %p527_p5 = scmp.lt.s32.totalorder %s521_s10, %s521_s10 }
   0xd   :  { %p528_p6 = por %p527_p5, %p526_p4 }
   0xf   :  { %p529_p7 = pnand %p528_p6, %p522_p3 }
  0x11   :  { %532 = shalt.err (!%p529_p7)
}
  0x12   :  { %s630_s11 = smov 64   ;;  %s631_s12 = smov 4  }
  0x13   :  { %39 = dma.hbm_to_vmem [thread:$0]  %s762_s2, 256, %s34_s25, [#allocation6], %s630_s11, %s630_s11, %s631_s12  }
  0x14   :  { %s632_s15 = smov [#allocation2]   ;;  %s633_s17 = smov [#allocation7]  }
  0x15   :  { %s22_s16 = sshll.u32 %s632_s15, 4  ;;  %s45_s18 = sshll.u32 %s633_s17, 4  ;;  %s23_s16 = int_to_ptr.vmem [resolvable:$true] %s22_s16  ;;  %s46_s18 = int_to_ptr.vmem [resolvable:$true] %s45_s18 }
  0x16   :  { %s533_s21 = scalar_lea.hbm %s760_s0, 32 }
  0x17   :  { %p534_p8 = scmp.ne.s32.totalorder %s760_s0, %s533_s21  ;;  %p537_p9 = scmp.lt.u32.totalorder %s533_s21, %s760_s0 }
  0x19   :  { %p539_p10 = pnand %p537_p9, %p534_p8 }
  0x1b   :  { %542 = shalt.err (!%p539_p10)
}
  0x1c   :  { %s543_s2 = scalar_lea.vmem %s23_s16, 32  ;;  %p548_p12 = scmp.lt.s32.totalorder %s23_s16, %s23_s16 }
  0x1d   :  { %p544_p11 = scmp.ne.s32.totalorder %s23_s16, %s543_s2  ;;  %p549_p13 = scmp.lt.s32.totalorder %s543_s2, %s543_s2 }
  0x1f   :  { %p550_p0 = por %p549_p13, %p548_p12 }
  0x21   :  { %p551_p1 = pnand %p550_p0, %p544_p11 }
  0x23   :  { %554 = shalt.err (!%p551_p1)
}
  0x24   :  { %25 = dma.hbm_to_vmem [thread:$0]  %s760_s0, 32, %s23_s16, [#allocation3]  }
  0x25   :  { %s555_s30 = scalar_lea.hbm %s763_s3, 256 }
  0x26   :  { %p556_p2 = scmp.ne.s32.totalorder %s763_s3, %s555_s30  ;;  %p559_p3 = scmp.lt.u32.totalorder %s555_s30, %s763_s3 }
  0x28   :  { %p561_p4 = pnand %p559_p3, %p556_p2 }
  0x2a   :  { %564 = shalt.err (!%p561_p4)
}
  0x2b   :  { %s565_s14 = scalar_lea.vmem %s46_s18, 256  ;;  %p570_p6 = scmp.lt.s32.totalorder %s46_s18, %s46_s18 }
  0x2c   :  { %p566_p5 = scmp.ne.s32.totalorder %s46_s18, %s565_s14  ;;  %p571_p7 = scmp.lt.s32.totalorder %s565_s14, %s565_s14 }
  0x2e   :  { %p572_p8 = por %p571_p7, %p570_p6 }
  0x30   :  { %p573_p9 = pnand %p572_p8, %p566_p5 }
  0x32   :  { %576 = shalt.err (!%p573_p9)
}
  0x33   :  { %51 = dma.hbm_to_vmem [thread:$0]  %s763_s3, 256, %s46_s18, [#allocation6], %s630_s11, %s630_s11, %s631_s12  }
  0x34   :  { %s634_s16 = smov [#allocation8]   ;;  %s577_s21 = scalar_lea.hbm %s765_s5, 2048 }
  0x35   :  { %s59_s17 = sshll.u32 %s634_s16, 4  ;;  %p578_p10 = scmp.ne.s32.totalorder %s765_s5, %s577_s21  ;;  %s60_s17 = int_to_ptr.vmem [resolvable:$true] %s59_s17 }
  0x36   :  { %p581_p11 = scmp.lt.u32.totalorder %s577_s21, %s765_s5 }
  0x38   :  { %p583_p12 = pnand %p581_p11, %p578_p10 }
  0x3a   :  { %586 = shalt.err (!%p583_p12)
}
  0x3b   :  { %s587_s2 = scalar_lea.vmem %s60_s17, 2048  ;;  %p592_p0 = scmp.lt.s32.totalorder %s60_s17, %s60_s17 }
  0x3c   :  { %p588_p13 = scmp.ne.s32.totalorder %s60_s17, %s587_s2  ;;  %p593_p1 = scmp.lt.s32.totalorder %s587_s2, %s587_s2 }
  0x3e   :  { %p594_p2 = por %p593_p1, %p592_p0 }
  0x40   :  { %p595_p3 = pnand %p594_p2, %p588_p13 }
  0x42   :  { %598 = shalt.err (!%p595_p3)
}
  0x43   :  { %65 = dma.hbm_to_vmem [thread:$0]  %s765_s5, 2048, %s60_s17, [#allocation9], %s630_s11, %s630_s11, %s631_s12  }
  0x44   :  { %621 = dma.done.wait [#allocation3], 32  }
  0x45   :  { %622 = vsyncadd [#allocation3], 4294967264 }
  0x46   :  { %623 = dma.done.wait [#allocation6], 512  }
  0x47   :  { %624 = vsyncadd [#allocation6], 4294966784 }
  0x48   :  { %625 = dma.done.wait [#allocation9], 2048  }
  0x49   :  { %626 = vsyncadd [#allocation9], 4294965248  ;;  %v635_v0 = vmov 0.0   ;;  %vm636_vm0 = vmmov 0   ;;  %v491_v1 = vld [vmem:[#allocation5] sm:$0xff]   ;;  %v492_v2 = vld [vmem:[#allocation5 + $0x8] sm:$0xff]   ;;  %v206_v25 = vlaneseq }
  0x4a   :  { %466 = vmatprep.subr.bf16.mxu1 %v635_v0  ;;  %470 = vmatprep.mubr.msk.bf16.mxu1 %vm636_vm0, %v635_v0  ;;  %v81_v3 = vld [vmem:[#allocation2] sm:$0x3]  ;;  %v493_v4 = vld [vmem:[#allocation7] sm:$0xff]   ;;  %v495_v6 = vld [vmem:[#allocation8 + $0x40] sm:$0xff]   ;;  %vm99_vm1 = vcmask 261120   ;;  %s637_s27 = smov [#allocation10]  }
  0x4b   :  { %467 = vmatpush3.bf16.msra.mxu1 %v491_v1  ;;  %v82_v5 = vpack.c.bf16 %v81_v3, %v81_v3  ;;  %v496_v7 = vld [vmem:[#allocation8] sm:$0xff]   ;;  %444 = vmatprep.subr.bf16.mxu0 %v495_v6  ;;  %v497_v8 = vld [vmem:[#allocation8 + $0x48] sm:$0xff]   ;;  %v494_v9 = vld [vmem:[#allocation7 + $0x8] sm:$0xff]   ;;  %v207_v26 = vshrl.u32 %v206_v25, 7  ;;  %s404_s28 = sshll.u32 %s637_s27, 4  ;;  %s405_s28 = int_to_ptr.vmem [resolvable:$true] %s404_s28 }
  0x4c   :  { %468 = vmatprep.subr.bf16.mxu1 %v635_v0  ;;  %445 = vmatpush3.bf16.msra.mxu0 %v496_v7  ;;  %v498_v10 = vld [vmem:[#allocation8 + $0x8] sm:$0xff]   ;;  %v499_v11 = vld [vmem:[#allocation8 + $0x50] sm:$0xff]   ;;  %v143_v12 = vld [vmem:[%s761_s1] sm:$0x3]  ;;  %s599_s29 = scalar_lea.vmem %s405_s28, 32  ;;  %p604_p5 = scmp.lt.s32.totalorder %s405_s28, %s405_s28 }
  0x4d   :  { %446 = vmatprep.subr.bf16.mxu0 %v497_v8  ;;  %v500_v13 = vld [vmem:[#allocation8 + $0x10] sm:$0xff]   ;;  %v501_v14 = vld [vmem:[#allocation8 + $0x58] sm:$0xff]   ;;  %v144_v15 = vpack.c.bf16 %v143_v12, %v143_v12  ;;  %v503_v17 = vld [vmem:[#allocation8 + $0x60] sm:$0xff]   ;;  %v208_v27 = vsub.s32 0, %v207_v26  ;;  %v212_v31 = vsub.s32 1, %v207_v26  ;;  %p600_p4 = scmp.ne.s32.totalorder %s405_s28, %s599_s29  ;;  %p605_p6 = scmp.lt.s32.totalorder %s599_s29, %s599_s29 }
  0x4e   :  { %v502_v16 = vld [vmem:[#allocation8 + $0x18] sm:$0xff]   ;;  %v504_v18 = vld [vmem:[#allocation8 + $0x20] sm:$0xff]   ;;  %v505_v19 = vld [vmem:[#allocation8 + $0x68] sm:$0xff]  }
  0x4f   :  { %469 = vmatpush3.bf16.msra.mxu1 %v492_v2  ;;  %v506_v20 = vld [vmem:[#allocation8 + $0x28] sm:$0xff]   ;;  %v507_v21 = vld [vmem:[#allocation8 + $0x70] sm:$0xff]   ;;  %v509_v23 = vld [vmem:[#allocation8 + $0x78] sm:$0xff]   ;;  %p606_p7 = por %p605_p6, %p604_p5 }
  0x50   :  { %474 = vmatprep.subr.bf16.mxu1 %v635_v0  ;;  %447 = vmatpush3.bf16.msra.mxu0 %v498_v10  ;;  %v508_v22 = vld [vmem:[#allocation8 + $0x30] sm:$0xff]   ;;  %v510_v24 = vld [vmem:[#allocation8 + $0x38] sm:$0xff]  }
  0x51   :  { %448 = vmatprep.subr.bf16.mxu0 %v499_v11  ;;  %v204_v28 = vld [vmem:[%s764_s4] sm:$0x3]  ;;  %p607_p8 = pnand %p606_p7, %p600_p4 }
  0x52   :  { %471 = vmatmul.mubr.msk.bf16.vlgmr.msra.gmra.mrb[0].mxu1 %vm99_vm1, %v82_v5  ;;  %v209_v32 = vrot.slane %v204_v28, %v208_v27  ;;  %v213_v35 = vrot.slane %v204_v28, %v212_v31  ;;  %v421_v47 = vld [vmem:[%s766_s6] ss:$0 sm:$0xff] }
  0x53   :  { %475 = vmatpush3.bf16.msra.mxu1 %v493_v4  ;;  %478 = vmatprep.mubr.msk.bf16.mxu1 %vm636_vm0, %v635_v0 }
  0x54   :  { %476 = vmatprep.subr.bf16.mxu1 %v635_v0  ;;  %449 = vmatpush3.bf16.msra.mxu0 %v500_v13 }
  0x55   :  { %450 = vmatprep.subr.bf16.mxu0 %v501_v14 }
  0x57   :  { %477 = vmatpush3.bf16.msra.mxu1 %v494_v9 }
  0x58   :  { %451 = vmatpush3.bf16.msra.mxu0 %v502_v16 }
  0x59   :  { %452 = vmatprep.subr.bf16.mxu0 %v503_v17 }
  0x5a   :  { %479 = vmatmul.mubr.msk.bf16.vlgmr.msra.gmra.mrb[4].mxu1 %vm99_vm1, %v144_v15 }
  0x5c   :  { %453 = vmatpush3.bf16.msra.mxu0 %v504_v18 }
  0x5d   :  { %454 = vmatprep.subr.bf16.mxu0 %v505_v19 }
  0x60   :  { %455 = vmatpush3.bf16.msra.mxu0 %v506_v20 }
  0x61   :  { %456 = vmatprep.subr.bf16.mxu0 %v507_v21 }
  0x64   :  { %457 = vmatpush3.bf16.msra.mxu0 %v508_v22 }
  0x65   :  { %458 = vmatprep.subr.bf16.mxu0 %v509_v23 }
  0x68   :  { %459 = vmatpush3.bf16.msra.mxu0 %v510_v24 }
 0x125   :  { %v137_v29 = vpop.f32.mrb[0].mxu1 }
 0x126   :  { %v472_v30 = vpop.f32.mrb[1].mxu1  ;;  %v216_v36 = vadd.f32 %v209_v32, %v137_v29 }
 0x127   :  { %v140_v33 = vpop.f32.mrb[2].mxu1 }
 0x128   :  { %v473_v34 = vpop.f32.mrb[3].mxu1  ;;  %v218_v40 = vmax.f32 %v216_v36, 0.0 }
 0x12a   :  { %v220_v45 = vpack.c.bf16 %v218_v40, %v218_v40 }
 0x12d   :  { %v198_v37 = vpop.f32.mrb[4].mxu1 }
 0x12e   :  { %v217_v38 = vadd.f32 %v213_v35, %v198_v37  ;;  %v480_v39 = vpop.f32.mrb[5].mxu1 }
 0x12f   :  { %v201_v41 = vpop.f32.mrb[6].mxu1 }
 0x130   :  { %v481_v42 = vpop.f32.mrb[7].mxu1  ;;  %v219_v43 = vmax.f32 %v217_v38, 0.0 }
 0x132   :  { %v221_v44 = vpack.c.bf16 %v219_v43, %v219_v43 }
 0x134   :  { %389 = vmatprep.mubr.bf16.mxu0 %v221_v44 }
 0x135   :  { %390 = vmatmul.mubr.bf16.vlgmr.msra.gmra.mrb[0].mxu0 %v220_v45 }
 0x208   :  { %v460_v46 = vpop.f32.mrb[0].mxu0 }
 0x209   :  { %v461_v48 = vpop.f32.mrb[1].mxu0 }
 0x20a   :  { %v462_v49 = vadd.f32 %v461_v48, %v460_v46  ;;  %v463_v50 = vpop.f32.mrb[2].mxu0 }
 0x20b   :  { %v464_v51 = vpop.f32.mrb[3].mxu0 }
 0x20c   :  { %v392_v52 = vadd.f32 %v462_v49, %v421_v47 }
 0x20e   :  { %397 = vst [vmem:[#allocation10] sm:$0x3] %v392_v52 }
 0x20f   :  { %610 = shalt.err (!%p607_p8)
}
 0x210   :  { %s611_s6 = scalar_lea.hbm %s767_s7, 32 }
 0x211   :  { %p612_p9 = scmp.ne.s32.totalorder %s767_s7, %s611_s6  ;;  %p615_p10 = scmp.lt.u32.totalorder %s611_s6, %s767_s7 }
 0x213   :  { %p617_p11 = pnand %p615_p10, %p612_p9 }
 0x215   :  { %620 = shalt.err (!%p617_p11)
}
 0x216   :  { %407 = dma.vmem_to_hbm [thread:$0]  %s405_s28, 32, %s767_s7, [#allocation4]  }
 0x217   :  { %627 = dma.done.wait [#allocation4], 32  }
 0x218   :  { %628 = vsyncadd [#allocation4], 4294967264 }
 0x219   :  { %411 = vsyncpa [#allocation3], 1 }
 0x21a   :  { %412 = vsyncpa [#allocation6], 1 }
 0x21b   :  { %413 = vsyncpa [#allocation9], 1 }
 0x21c   :  { %414 = vsyncpa [#allocation4], 1 }

// kernel: tpu_custom_call.1
= control target key start
LH: loop header
LB: loop body
LE: loop exit
PB: predicated region body
PF: predicated region fallthrough
CT: control target
= control target key end

     0   :  { %12 = vsyncpa [#allocation3], 0  ;;  %s760_s0 = inlined_call_operand.hbm [shape: f32[2,32], index: 0, kind: input, shape index: {}]   ;;  %s761_s1 = inlined_call_operand.vmem [shape: f32[2,32], index: 1, kind: input, shape index: {}]   ;;  %s762_s2 = inlined_call_operand.hbm [shape: bf16[32,128], index: 2, kind: input, shape index: {}]   ;;  %s763_s3 = inlined_call_operand.hbm [shape: bf16[32,128], index: 3, kind: input, shape index: {}]   ;;  %s764_s4 = inlined_call_operand.vmem [shape: f32[1,256], index: 4, kind: input, shape index: {}]   ;;  %s765_s5 = inlined_call_operand.hbm [shape: bf16[256,128], index: 5, kind: input, shape index: {}]   ;;  %s766_s6 = inlined_call_operand.vmem [shape: f32[1,128], index: 6, kind: input, shape index: {}]   ;;  %s767_s7 = inlined_call_operand.hbm [shape: f32[2,128], index: 7, kind: output, shape index: {}]  }
   0x1   :  { %13 = vsyncpa [#allocation6], 0 }
   0x2   :  { %14 = vsyncpa [#allocation9], 0 }
   0x3   :  { %15 = vsyncpa [#allocation4], 0  ;;  %s629_s24 = smov [#allocation5]   ;;  %s511_s28 = scalar_lea.hbm %s762_s2, 256 }
   0x4   :  { %s33_s25 = sshll.u32 %s629_s24, 4  ;;  %p512_p0 = scmp.ne.s32.totalorder %s762_s2, %s511_s28  ;;  %s34_s25 = int_to_ptr.vmem [resolvable:$true] %s33_s25 }
   0x5   :  { %p515_p1 = scmp.lt.u32.totalorder %s511_s28, %s762_s2 }
   0x7   :  { %p517_p2 = pnand %p515_p1, %p512_p0 }
   0x9   :  { %520 = shalt.err (!%p517_p2)
}
   0xa   :  { %s521_s10 = scalar_lea.vmem %s34_s25, 256  ;;  %p526_p4 = scmp.lt.s32.totalorder %s34_s25, %s34_s25 }
   0xb   :  { %p522_p3 = scmp.ne.s32.totalorder %s34_s25, %s521_s10  ;;  %p527_p5 = scmp.lt.s32.totalorder %s521_s10, %s521_s10 }
   0xd   :  { %p528_p6 = por %p527_p5, %p526_p4 }
   0xf   :  { %p529_p7 = pnand %p528_p6, %p522_p3 }
  0x11   :  { %532 = shalt.err (!%p529_p7)
}
  0x12   :  { %s630_s11 = smov 64   ;;  %s631_s12 = smov 4  }
  0x13   :  { %39 = dma.hbm_to_vmem [thread:$0]  %s762_s2, 256, %s34_s25, [#allocation6], %s630_s11, %s630_s11, %s631_s12  }
  0x14   :  { %s632_s15 = smov [#allocation2]   ;;  %s633_s17 = smov [#allocation7]  }
  0x15   :  { %s22_s16 = sshll.u32 %s632_s15, 4  ;;  %s45_s18 = sshll.u32 %s633_s17, 4  ;;  %s23_s16 = int_to_ptr.vmem [resolvable:$true] %s22_s16  ;;  %s46_s18 = int_to_ptr.vmem [resolvable:$true] %s45_s18 }
  0x16   :  { %s533_s21 = scalar_lea.hbm %s760_s0, 32 }
  0x17   :  { %p534_p8 = scmp.ne.s32.totalorder %s760_s0, %s533_s21  ;;  %p537_p9 = scmp.lt.u32.totalorder %s533_s21, %s760_s0 }
  0x19   :  { %p539_p10 = pnand %p537_p9, %p534_p8 }
  0x1b   :  { %542 = shalt.err (!%p539_p10)
}
  0x1c   :  { %s543_s2 = scalar_lea.vmem %s23_s16, 32  ;;  %p548_p12 = scmp.lt.s32.totalorder %s23_s16, %s23_s16 }
  0x1d   :  { %p544_p11 = scmp.ne.s32.totalorder %s23_s16, %s543_s2  ;;  %p549_p13 = scmp.lt.s32.totalorder %s543_s2, %s543_s2 }
  0x1f   :  { %p550_p0 = por %p549_p13, %p548_p12 }
  0x21   :  { %p551_p1 = pnand %p550_p0, %p544_p11 }
  0x23   :  { %554 = shalt.err (!%p551_p1)
}
  0x24   :  { %25 = dma.hbm_to_vmem [thread:$0]  %s760_s0, 32, %s23_s16, [#allocation3]  }
  0x25   :  { %s555_s30 = scalar_lea.hbm %s763_s3, 256 }
  0x26   :  { %p556_p2 = scmp.ne.s32.totalorder %s763_s3, %s555_s30  ;;  %p559_p3 = scmp.lt.u32.totalorder %s555_s30, %s763_s3 }
  0x28   :  { %p561_p4 = pnand %p559_p3, %p556_p2 }
  0x2a   :  { %564 = shalt.err (!%p561_p4)
}
  0x2b   :  { %s565_s14 = scalar_lea.vmem %s46_s18, 256  ;;  %p570_p6 = scmp.lt.s32.totalorder %s46_s18, %s46_s18 }
  0x2c   :  { %p566_p5 = scmp.ne.s32.totalorder %s46_s18, %s565_s14  ;;  %p571_p7 = scmp.lt.s32.totalorder %s565_s14, %s565_s14 }
  0x2e   :  { %p572_p8 = por %p571_p7, %p570_p6 }
  0x30   :  { %p573_p9 = pnand %p572_p8, %p566_p5 }
  0x32   :  { %576 = shalt.err (!%p573_p9)
}
  0x33   :  { %51 = dma.hbm_to_vmem [thread:$0]  %s763_s3, 256, %s46_s18, [#allocation6], %s630_s11, %s630_s11, %s631_s12  }
  0x34   :  { %s634_s16 = smov [#allocation8]   ;;  %s577_s21 = scalar_lea.hbm %s765_s5, 2048 }
  0x35   :  { %s59_s17 = sshll.u32 %s634_s16, 4  ;;  %p578_p10 = scmp.ne.s32.totalorder %s765_s5, %s577_s21  ;;  %s60_s17 = int_to_ptr.vmem [resolvable:$true] %s59_s17 }
  0x36   :  { %p581_p11 = scmp.lt.u32.totalorder %s577_s21, %s765_s5 }
  0x38   :  { %p583_p12 = pnand %p581_p11, %p578_p10 }
  0x3a   :  { %586 = shalt.err (!%p583_p12)
}
  0x3b   :  { %s587_s2 = scalar_lea.vmem %s60_s17, 2048  ;;  %p592_p0 = scmp.lt.s32.totalorder %s60_s17, %s60_s17 }
  0x3c   :  { %p588_p13 = scmp.ne.s32.totalorder %s60_s17, %s587_s2  ;;  %p593_p1 = scmp.lt.s32.totalorder %s587_s2, %s587_s2 }
  0x3e   :  { %p594_p2 = por %p593_p1, %p592_p0 }
  0x40   :  { %p595_p3 = pnand %p594_p2, %p588_p13 }
  0x42   :  { %598 = shalt.err (!%p595_p3)
}
  0x43   :  { %65 = dma.hbm_to_vmem [thread:$0]  %s765_s5, 2048, %s60_s17, [#allocation9], %s630_s11, %s630_s11, %s631_s12  }
  0x44   :  { %621 = dma.done.wait [#allocation3], 32  }
  0x45   :  { %622 = vsyncadd [#allocation3], 4294967264 }
  0x46   :  { %623 = dma.done.wait [#allocation6], 512  }
  0x47   :  { %624 = vsyncadd [#allocation6], 4294966784 }
  0x48   :  { %625 = dma.done.wait [#allocation9], 2048  }
  0x49   :  { %626 = vsyncadd [#allocation9], 4294965248  ;;  %v635_v0 = vmov 0.0   ;;  %vm636_vm0 = vmmov 0   ;;  %v491_v1 = vld [vmem:[#allocation5] sm:$0xff]   ;;  %v492_v2 = vld [vmem:[#allocation5 + $0x8] sm:$0xff]   ;;  %v206_v25 = vlaneseq }
  0x4a   :  { %466 = vmatprep.subr.bf16.mxu1 %v635_v0  ;;  %470 = vmatprep.mubr.msk.bf16.mxu1 %vm636_vm0, %v635_v0  ;;  %v81_v3 = vld [vmem:[#allocation2] sm:$0x3]  ;;  %v493_v4 = vld [vmem:[#allocation7] sm:$0xff]   ;;  %v495_v6 = vld [vmem:[#allocation8 + $0x40] sm:$0xff]   ;;  %vm99_vm1 = vcmask 261120   ;;  %s637_s27 = smov [#allocation10]  }
  0x4b   :  { %467 = vmatpush3.bf16.msra.mxu1 %v491_v1  ;;  %v82_v5 = vpack.c.bf16 %v81_v3, %v81_v3  ;;  %v496_v7 = vld [vmem:[#allocation8] sm:$0xff]   ;;  %444 = vmatprep.subr.bf16.mxu0 %v495_v6  ;;  %v497_v8 = vld [vmem:[#allocation8 + $0x48] sm:$0xff]   ;;  %v494_v9 = vld [vmem:[#allocation7 + $0x8] sm:$0xff]   ;;  %v207_v26 = vshrl.u32 %v206_v25, 7  ;;  %s404_s28 = sshll.u32 %s637_s27, 4  ;;  %s405_s28 = int_to_ptr.vmem [resolvable:$true] %s404_s28 }
  0x4c   :  { %468 = vmatprep.subr.bf16.mxu1 %v635_v0  ;;  %445 = vmatpush3.bf16.msra.mxu0 %v496_v7  ;;  %v498_v10 = vld [vmem:[#allocation8 + $0x8] sm:$0xff]   ;;  %v499_v11 = vld [vmem:[#allocation8 + $0x50] sm:$0xff]   ;;  %v143_v12 = vld [vmem:[%s761_s1] sm:$0x3]  ;;  %s599_s29 = scalar_lea.vmem %s405_s28, 32  ;;  %p604_p5 = scmp.lt.s32.totalorder %s405_s28, %s405_s28 }
  0x4d   :  { %446 = vmatprep.subr.bf16.mxu0 %v497_v8  ;;  %v500_v13 = vld [vmem:[#allocation8 + $0x10] sm:$0xff]   ;;  %v501_v14 = vld [vmem:[#allocation8 + $0x58] sm:$0xff]   ;;  %v144_v15 = vpack.c.bf16 %v143_v12, %v143_v12  ;;  %v503_v17 = vld [vmem:[#allocation8 + $0x60] sm:$0xff]   ;;  %v208_v27 = vsub.s32 0, %v207_v26  ;;  %v212_v31 = vsub.s32 1, %v207_v26  ;;  %p600_p4 = scmp.ne.s32.totalorder %s405_s28, %s599_s29  ;;  %p605_p6 = scmp.lt.s32.totalorder %s599_s29, %s599_s29 }
  0x4e   :  { %v502_v16 = vld [vmem:[#allocation8 + $0x18] sm:$0xff]   ;;  %v504_v18 = vld [vmem:[#allocation8 + $0x20] sm:$0xff]   ;;  %v505_v19 = vld [vmem:[#allocation8 + $0x68] sm:$0xff]  }
  0x4f   :  { %469 = vmatpush3.bf16.msra.mxu1 %v492_v2  ;;  %v506_v20 = vld [vmem:[#allocation8 + $0x28] sm:$0xff]   ;;  %v507_v21 = vld [vmem:[#allocation8 + $0x70] sm:$0xff]   ;;  %v509_v23 = vld [vmem:[#allocation8 + $0x78] sm:$0xff]   ;;  %p606_p7 = por %p605_p6, %p604_p5 }
  0x50   :  { %474 = vmatprep.subr.bf16.mxu1 %v635_v0  ;;  %447 = vmatpush3.bf16.msra.mxu0 %v498_v10  ;;  %v508_v22 = vld [vmem:[#allocation8 + $0x30] sm:$0xff]   ;;  %v510_v24 = vld [vmem:[#allocation8 + $0x38] sm:$0xff]  }
  0x51   :  { %448 = vmatprep.subr.bf16.mxu0 %v499_v11  ;;  %v204_v28 = vld [vmem:[%s764_s4] sm:$0x3]  ;;  %p607_p8 = pnand %p606_p7, %p600_p4 }
  0x52   :  { %471 = vmatmul.mubr.msk.bf16.vlgmr.msra.gmra.mrb[0].mxu1 %vm99_vm1, %v82_v5  ;;  %v209_v32 = vrot.slane %v204_v28, %v208_v27  ;;  %v213_v35 = vrot.slane %v204_v28, %v212_v31  ;;  %v421_v47 = vld [vmem:[%s766_s6] ss:$0 sm:$0xff] }
  0x53   :  { %475 = vmatpush3.bf16.msra.mxu1 %v493_v4  ;;  %478 = vmatprep.mubr.msk.bf16.mxu1 %vm636_vm0, %v635_v0 }
  0x54   :  { %476 = vmatprep.subr.bf16.mxu1 %v635_v0  ;;  %449 = vmatpush3.bf16.msra.mxu0 %v500_v13 }
  0x55   :  { %450 = vmatprep.subr.bf16.mxu0 %v501_v14 }
  0x57   :  { %477 = vmatpush3.bf16.msra.mxu1 %v494_v9 }
  0x58   :  { %451 = vmatpush3.bf16.msra.mxu0 %v502_v16 }
  0x59   :  { %452 = vmatprep.subr.bf16.mxu0 %v503_v17 }
  0x5a   :  { %479 = vmatmul.mubr.msk.bf16.vlgmr.msra.gmra.mrb[4].mxu1 %vm99_vm1, %v144_v15 }
  0x5c   :  { %453 = vmatpush3.bf16.msra.mxu0 %v504_v18 }
  0x5d   :  { %454 = vmatprep.subr.bf16.mxu0 %v505_v19 }
  0x60   :  { %455 = vmatpush3.bf16.msra.mxu0 %v506_v20 }
  0x61   :  { %456 = vmatprep.subr.bf16.mxu0 %v507_v21 }
  0x64   :  { %457 = vmatpush3.bf16.msra.mxu0 %v508_v22 }
  0x65   :  { %458 = vmatprep.subr.bf16.mxu0 %v509_v23 }
  0x68   :  { %459 = vmatpush3.bf16.msra.mxu0 %v510_v24 }
 0x125   :  { %v137_v29 = vpop.f32.mrb[0].mxu1 }
 0x126   :  { %v472_v30 = vpop.f32.mrb[1].mxu1  ;;  %v216_v36 = vadd.f32 %v209_v32, %v137_v29 }
 0x127   :  { %v140_v33 = vpop.f32.mrb[2].mxu1 }
 0x128   :  { %v473_v34 = vpop.f32.mrb[3].mxu1  ;;  %v218_v40 = vmax.f32 %v216_v36, 0.0 }
 0x12a   :  { %v220_v45 = vpack.c.bf16 %v218_v40, %v218_v40 }
 0x12d   :  { %v198_v37 = vpop.f32.mrb[4].mxu1 }
 0x12e   :  { %v217_v38 = vadd.f32 %v213_v35, %v198_v37  ;;  %v480_v39 = vpop.f32.mrb[5].mxu1 }
 0x12f   :  { %v201_v41 = vpop.f32.mrb[6].mxu1 }
 0x130   :  { %v481_v42 = vpop.f32.mrb[7].mxu1  ;;  %v219_v43 = vmax.f32 %v217_v38, 0.0 }
 0x132   :  { %v221_v44 = vpack.c.bf16 %v219_v43, %v219_v43 }
 0x134   :  { %389 = vmatprep.mubr.bf16.mxu0 %v221_v44 }
 0x135   :  { %390 = vmatmul.mubr.bf16.vlgmr.msra.gmra.mrb[0].mxu0 %v220_v45 }
 0x208   :  { %v460_v46 = vpop.f32.mrb[0].mxu0 }
 0x209   :  { %v461_v48 = vpop.f32.mrb[1].mxu0 }
 0x20a   :  { %v462_v49 = vadd.f32 %v461_v48, %v460_v46  ;;  %v463_v50 = vpop.f32.mrb[2].mxu0 }
 0x20b   :  { %v464_v51 = vpop.f32.mrb[3].mxu0 }
 0x20c   :  { %v392_v52 = vadd.f32 %v462_v49, %v421_v47 }
 0x20e   :  { %397 = vst [vmem:[#allocation10] sm:$0x3] %v392_v52 }
 0x20f   :  { %610 = shalt.err (!%p607_p8)
}
 0x210   :  { %s611_s6 = scalar_lea.hbm %s767_s7, 32 }
 0x211   :  { %p612_p9 = scmp.ne.s32.totalorder %s767_s7, %s611_s6  ;;  %p615_p10 = scmp.lt.u32.totalorder %s611_s6, %s767_s7 }
 0x213   :  { %p617_p11 = pnand %p615_p10, %p612_p9 }
 0x215   :  { %620 = shalt.err (!%p617_p11)
}
 0x216   :  { %407 = dma.vmem_to_hbm [thread:$0]  %s405_s28, 32, %s767_s7, [#allocation4]  }
 0x217   :  { %627 = dma.done.wait [#allocation4], 32  }
 0x218   :  { %628 = vsyncadd [#allocation4], 4294967264 }
 0x219   :  { %411 = vsyncpa [#allocation3], 1 }
 0x21a   :  { %412 = vsyncpa [#allocation6], 1 }
 0x21b   :  { %413 = vsyncpa [#allocation9], 1 }
 0x21c   :  { %414 = vsyncpa [#allocation4], 1 }

</bundles_post_ra>
